<compile_context>
chip_gen: v7x
topology: tpu7x:2x2x1
jax: 0.10.0
libtpu: 0.0.40
codegen_flags: <defaults>
</compile_context>

<pallas_src>
import functools

import jax
import jax.numpy as jnp
from jax import lax
from jax.experimental import pallas as pl
from jax.experimental.pallas import tpu as pltpu

_EPS = 1e-6  # matches torch.nn.functional.pairwise_distance default eps


def _detect_tpu():
    """Conservatively detect (physical VMEM bytes per core, TensorCores per device)."""
    kind = ""
    try:
        kind = jax.devices()[0].device_kind.lower()
    except Exception:
        pass
    num_cores = 2 if "v7" in kind else 1           # v7x: 2 TCs per chip
    if "v7" in kind:
        vmem_phys = 64 * 1024 * 1024               # v7x: 64 MiB VMEM per TC
    elif any(s in kind for s in ("v4", "v5", "v6")):
        vmem_phys = 128 * 1024 * 1024              # v4/v5e/v5p/v6e: 128 MiB
    elif "v2" in kind or "v3" in kind:
        vmem_phys = 16 * 1024 * 1024
    else:
        vmem_phys = 64 * 1024 * 1024               # unknown chip: v7x-safe default
    try:
        info = pltpu.get_tpu_info()
        v = int(getattr(info, "vmem_capacity_bytes", 0))
        if v > 0:
            vmem_phys = max(16 * 1024 * 1024, min(128 * 1024 * 1024, v))
    except Exception:
        pass
    return vmem_phys, num_cores


def _contrastive_loss_kernel(margin, batch_size, tile_b, tiles_per_core, needs_mask,
                             e1_ref, e2_ref, t_ref, out_ref, acc_ref):
    c = pl.program_id(0)          # per-TensorCore split ("parallel")
    i = pl.program_id(1)          # batch-tile index within this core (reduction)

    @pl.when(i == 0)
    def _():
        acc_ref[...] = jnp.zeros_like(acc_ref)

    # Stream native dtype; compute in f32 (matches f32 reference numerics and
    # avoids bf16 VALU gaps on v5e).
    diff = e1_ref[...].astype(jnp.float32) - e2_ref[...].astype(jnp.float32) + _EPS
    d2 = jnp.sum(diff * diff, axis=-1, keepdims=True)          # (tile_b, 1) = ||.||^2
    d = jnp.sqrt(d2)                                            # euclidean distance
    t = t_ref[...].astype(jnp.float32)                          # (tile_b, 1)
    hinge = jnp.maximum(margin - d, 0.0)                        # clamp(margin - d, 0)
    per_row = (1.0 - t) * d2 + t * (hinge * hinge)              # (tile_b, 1)

    if needs_mask:
        # Zero contributions of padded rows (partial last tile and/or fully
        # padded tiles of the second core).  Keep the select (NOT a multiply)
        # so NaN/Inf from garbage-padded rows cannot propagate.
        tile_idx = c * tiles_per_core + i
        row_ids = tile_idx * tile_b + lax.broadcasted_iota(jnp.int32, per_row.shape, 0)
        per_row = jnp.where(row_ids < batch_size, per_row, 0.0)

    # Deferred reduction: cheap VPU add per step; cross-sublane reduce only once.
    acc_ref[...] += per_row

    @pl.when(i == pl.num_programs(1) - 1)
    def _():
        out_ref[...] = jnp.sum(acc_ref[...]).reshape(1, 1, 1)


def contrastive_loss(embedding1, embedding2, target, margin=1.0,
                     tile_b=None, num_cores=None):
    """Pallas equivalent of ContrastiveLoss(margin)(embedding1, embedding2, target)."""
    B, D = embedding1.shape
    t = target.reshape(B, 1).astype(jnp.float32)
    itemsize = jnp.dtype(embedding1.dtype).itemsize

    vmem_phys, detected_cores = _detect_tpu()
    if num_cores is None:
        num_cores = detected_cores
    # Leave ~25% of physical VMEM as headroom for the compiler.
    vmem_limit = (vmem_phys * 3) // 4

    # VMEM bytes consumed per batch row at a given tile size:
    #   2 inputs x 2 pipeline buffers x D x itemsize    embedding stream
    # + 2 x D x 4                                       f32 elementwise temporaries
    # + 2 x 512                                         (tile_b,1) f32 target block, lane-padded to 128
    # + 512                                             (tile_b,1) f32 accumulator scratch
    bytes_per_row = 4 * D * itemsize + 2 * D * 4 + 3 * 512

    if tile_b is None:
        budget = (vmem_limit * 2) // 3      # rest is headroom for output / DMA bookkeeping
        tile_b = max(8, (budget // bytes_per_row) // 8 * 8)
    else:
        tile_b = int(tile_b)
        if tile_b < B:
            tile_b = max(8, (tile_b // 8) * 8)
    if tile_b >= B:
        tile_b = B                          # single full block (any B is valid then)
    # TODO(synk): for extremely wide embeddings where even an 8-row tile exceeds
    # the VMEM budget, add a second grid axis over 128-wide D chunks with a
    # partial-d2 scratch instead of flooring tile_b at 8.

    num_tiles = pl.cdiv(B, tile_b)
    num_cores = max(1, min(int(num_cores), num_tiles))
    tiles_per_core = pl.cdiv(num_tiles, num_cores)
    total_tiles = num_cores * tiles_per_core
    needs_mask = (total_tiles * tile_b != B)
    last_tile = num_tiles - 1

    def row_block(c, i):
        idx = c * tiles_per_core + i
        if total_tiles > num_tiles:
            # Fully padded tiles (uneven core split) re-read the last real tile;
            # their rows are masked out in the kernel.
            idx = jnp.minimum(idx, last_tile)
        return (idx, 0)

    kernel = functools.partial(
        _contrastive_loss_kernel, float(margin), int(B), int(tile_b),
        int(tiles_per_core), bool(needs_mask))

    cost = pl.CostEstimate(
        flops=5 * B * D,
        transcendentals=B,
        bytes_accessed=2 * B * D * itemsize + B * 4 + num_cores * 4,
    )

    out = pl.pallas_call(
        kernel,
        out_shape=jax.ShapeDtypeStruct((num_cores, 1, 1), jnp.float32),
        grid_spec=pltpu.PrefetchScalarGridSpec(
            num_scalar_prefetch=0,
            grid=(num_cores, tiles_per_core),
            in_specs=[
                pl.BlockSpec((tile_b, D), row_block),
                pl.BlockSpec((tile_b, D), row_block),
                pl.BlockSpec((tile_b, 1), row_block),
            ],
            out_specs=pl.BlockSpec((1, 1, 1), lambda c, i: (c, 0, 0)),
            scratch_shapes=[pltpu.VMEM((tile_b, 1), jnp.float32)],
        ),
        compiler_params=pltpu.CompilerParams(
            # Leading axis: per-core partial sums (parallel).  Inner axis:
            # accumulation over batch tiles (reduction -> arbitrary).
            dimension_semantics=("parallel", "arbitrary"),
            vmem_limit_bytes=int(vmem_limit),
        ),
        cost_estimate=cost,
    )(embedding1, embedding2, t)

    return jnp.sum(out) * (1.0 / B)


def _reference_loss(e1, e2, target, margin):
    # Pure-JAX reference mirroring the PyTorch forward exactly.
    diff = e1.astype(jnp.float32) - e2.astype(jnp.float32) + _EPS
    d = jnp.sqrt(jnp.sum(diff * diff, axis=-1))
    t = target.astype(jnp.float32)
    hinge = jnp.maximum(margin - d, 0.0)
    return jnp.mean((1.0 - t) * d * d + t * hinge * hinge)


if __name__ == "__main__":
    key = jax.random.PRNGKey(0)
    k1, k2, k3 = jax.random.split(key, 3)
    margin = 1.0
    D = 32

    # 1) Small batch, single full block, auto tile sizing.
    B = 8
    e1 = jax.random.normal(k1, (B, D), dtype=jnp.float32)
    e2 = jax.random.normal(k2, (B, D), dtype=jnp.float32)
    tg = jax.random.bernoulli(k3, 0.5, (B,)).astype(jnp.float32)
    loss = jax.block_until_ready(contrastive_loss(e1, e2, tg, margin=margin))
    ref = _reference_loss(e1, e2, tg, margin)
    assert jnp.allclose(loss, ref, rtol=1e-5, atol=1e-5), (loss, ref)

    # 2) Tiled path with a partial (masked) last tile: B not a multiple of tile_b.
    B2 = 20
    e1b = jax.random.normal(k1, (B2, D), dtype=jnp.float32)
    e2b = jax.random.normal(k2, (B2, D), dtype=jnp.float32)
    tgb = jax.random.bernoulli(k3, 0.5, (B2,)).astype(jnp.float32)
    loss2 = jax.block_until_ready(
        contrastive_loss(e1b, e2b, tgb, margin=margin, tile_b=8))
    ref2 = _reference_loss(e1b, e2b, tgb, margin)
    assert jnp.allclose(loss2, ref2, rtol=1e-5, atol=1e-5), (loss2, ref2)

    # 3) Two-core split structure (even split -> exercised on any generation;
    #    real 2x only on v7x where both TensorCores run the parallel axis).
    B3 = 32
    e1c = jax.random.normal(k1, (B3, D), dtype=jnp.float32)
    e2c = jax.random.normal(k2, (B3, D), dtype=jnp.float32)
    tgc = jax.random.bernoulli(k3, 0.5, (B3,)).astype(jnp.float32)
    loss3 = jax.block_until_ready(
        contrastive_loss(e1c, e2c, tgc, margin=margin, tile_b=8, num_cores=2))
    ref3 = _reference_loss(e1c, e2c, tgc, margin)
    assert jnp.allclose(loss3, ref3, rtol=1e-5, atol=1e-5), (loss3, ref3)

    print("KERNEL_OK")
</pallas_src>

<mosaic_0001>
module attributes {stable_mosaic.version = 11 : i64} {
  func.func @_contrastive_loss_kernel(%arg0: i32, %arg1: i32, %arg2: memref<8x32xf32, #tpu.memory_space<vmem>>, %arg3: memref<8x32xf32, #tpu.memory_space<vmem>>, %arg4: memref<8x1xf32, #tpu.memory_space<vmem>>, %arg5: memref<1x1x1xf32, #tpu.memory_space<vmem>>, %arg6: memref<8x1xf32, #tpu.memory_space<vmem>>) attributes {dimension_semantics = [#tpu.dimension_semantics<parallel>, #tpu.dimension_semantics<arbitrary>], iteration_bounds = array<i64: 1, 1>, scalar_prefetch = 0 : i64, scratch_operands = 1 : i64, tpu.core_type = #tpu.core_type<tc>, window_params = [{transform_indices = @transform_0, window_bounds = array<i64: 8, 32>}, {transform_indices = @transform_1, window_bounds = array<i64: 8, 32>}, {transform_indices = @transform_2, window_bounds = array<i64: 8, 1>}, {transform_indices = @transform_3, window_bounds = array<i64: 1, 1, 1>}]} {
    %c0_i32 = arith.constant 0 : i32
    %0 = arith.cmpi eq, %arg1, %c0_i32 : i32
    %1 = arith.extui %0 : i1 to i32
    %c0_i32_0 = arith.constant 0 : i32
    %2 = arith.cmpi ne, %1, %c0_i32_0 : i32
    scf.if %2 {
      %cst_16 = arith.constant 0.000000e+00 : f32
      %29 = vector.broadcast %cst_16 : f32 to vector<8x1xf32>
      %c0_17 = arith.constant 0 : index
      %c0_18 = arith.constant 0 : index
      %30 = vector.load %arg6[%c0_17, %c0_18] : memref<8x1xf32, #tpu.memory_space<vmem>>, vector<8x1xf32>
      tpu.vector_store %arg6[%c0_17, %c0_18], %29 {strides = array<i32>} : memref<8x1xf32, #tpu.memory_space<vmem>>, vector<8x1xf32>,
    } else {
    }
    %c0 = arith.constant 0 : index
    %c0_1 = arith.constant 0 : index
    %3 = vector.load %arg2[%c0, %c0_1] : memref<8x32xf32, #tpu.memory_space<vmem>>, vector<8x32xf32>
    %c0_2 = arith.constant 0 : index
    %c0_3 = arith.constant 0 : index
    %4 = vector.load %arg3[%c0_2, %c0_3] : memref<8x32xf32, #tpu.memory_space<vmem>>, vector<8x32xf32>
    %5 = arith.subf %3, %4 : vector<8x32xf32>
    %cst = arith.constant 9.99999997E-7 : f32
    %6 = vector.broadcast %cst : f32 to vector<8x32xf32>
    %7 = arith.addf %5, %6 : vector<8x32xf32>
    %8 = arith.mulf %7, %7 : vector<8x32xf32>
    %cst_4 = arith.constant dense<0.000000e+00> : vector<8xf32>
    %9 = vector.multi_reduction <add>, %8, %cst_4 [1] : vector<8x32xf32> to vector<8xf32>
    %10 = vector.shape_cast %9 : vector<8xf32> to vector<8x1xf32>
    %11 = math.sqrt %10 : vector<8x1xf32>
    %c0_5 = arith.constant 0 : index
    %c0_6 = arith.constant 0 : index
    %12 = vector.load %arg4[%c0_5, %c0_6] : memref<8x1xf32, #tpu.memory_space<vmem>>, vector<8x1xf32>
    %cst_7 = arith.constant 1.000000e+00 : f32
    %13 = vector.broadcast %cst_7 : f32 to vector<8x1xf32>
    %14 = arith.subf %13, %11 : vector<8x1xf32>
    %cst_8 = arith.constant 0.000000e+00 : f32
    %15 = vector.broadcast %cst_8 : f32 to vector<8x1xf32>
    %16 = arith.maximumf %14, %15 : vector<8x1xf32>
    %cst_9 = arith.constant 1.000000e+00 : f32
    %17 = vector.broadcast %cst_9 : f32 to vector<8x1xf32>
    %18 = arith.subf %17, %12 : vector<8x1xf32>
    %19 = arith.mulf %18, %10 : vector<8x1xf32>
    %20 = arith.mulf %16, %16 : vector<8x1xf32>
    %21 = arith.mulf %12, %20 : vector<8x1xf32>
    %22 = arith.addf %19, %21 : vector<8x1xf32>
    %c0_10 = arith.constant 0 : index
    %c0_11 = arith.constant 0 : index
    %23 = vector.load %arg6[%c0_10, %c0_11] : memref<8x1xf32, #tpu.memory_space<vmem>>, vector<8x1xf32>
    %24 = arith.addf %23, %22 : vector<8x1xf32>
    %c0_12 = arith.constant 0 : index
    %c0_13 = arith.constant 0 : index
    %25 = vector.load %arg6[%c0_12, %c0_13] : memref<8x1xf32, #tpu.memory_space<vmem>>, vector<8x1xf32>
    tpu.vector_store %arg6[%c0_12, %c0_13], %24 {strides = array<i32>} : memref<8x1xf32, #tpu.memory_space<vmem>>, vector<8x1xf32>,
    %c0_i32_14 = arith.constant 0 : i32
    %26 = arith.cmpi eq, %arg1, %c0_i32_14 : i32
    %27 = arith.extui %26 : i1 to i32
    %c0_i32_15 = arith.constant 0 : i32
    %28 = arith.cmpi ne, %27, %c0_i32_15 : i32
    scf.if %28 {
      %c0_16 = arith.constant 0 : index
      %c0_17 = arith.constant 0 : index
      %29 = vector.load %arg6[%c0_16, %c0_17] : memref<8x1xf32, #tpu.memory_space<vmem>>, vector<8x1xf32>
      %30 = vector.shape_cast %29 : vector<8x1xf32> to vector<1x8x1xf32>
      %cst_18 = arith.constant dense<0.000000e+00> : vector<1xf32>
      %31 = vector.multi_reduction <add>, %30, %cst_18 [1, 2] : vector<1x8x1xf32> to vector<1xf32>
      %32 = vector.shape_cast %31 : vector<1xf32> to vector<1x1x1xf32>
      %33 = vector.extract %32[0, 0, 0] : f32 from vector<1x1x1xf32>
      %34 = vector.broadcast %33 : f32 to vector<1x1x1xf32>
      %c0_19 = arith.constant 0 : index
      %c0_20 = arith.constant 0 : index
      %c0_21 = arith.constant 0 : index
      %35 = vector.load %arg5[%c0_19, %c0_20, %c0_21] : memref<1x1x1xf32, #tpu.memory_space<vmem>>, vector<1x1x1xf32>
      tpu.vector_store %arg5[%c0_19, %c0_20, %c0_21], %34 {strides = array<i32>} : memref<1x1x1xf32, #tpu.memory_space<vmem>>, vector<1x1x1xf32>,
    } else {
    }
    return
  }
  func.func @transform_0(%arg0: i32, %arg1: i32) -> (i32, i32) {
    %c1_i32 = arith.constant 1 : i32
    %0 = arith.muli %arg0, %c1_i32 : i32
    %1 = arith.addi %0, %arg1 : i32
    %c0_i32 = arith.constant 0 : i32
    %c0_i32_0 = arith.constant 0 : i32
    return %1, %c0_i32 : i32, i32
  }
  func.func @transform_1(%arg0: i32, %arg1: i32) -> (i32, i32) {
    %c1_i32 = arith.constant 1 : i32
    %0 = arith.muli %arg0, %c1_i32 : i32
    %1 = arith.addi %0, %arg1 : i32
    %c0_i32 = arith.constant 0 : i32
    %c0_i32_0 = arith.constant 0 : i32
    return %1, %c0_i32 : i32, i32
  }
  func.func @transform_2(%arg0: i32, %arg1: i32) -> (i32, i32) {
    %c1_i32 = arith.constant 1 : i32
    %0 = arith.muli %arg0, %c1_i32 : i32
    %1 = arith.addi %0, %arg1 : i32
    %c0_i32 = arith.constant 0 : i32
    %c0_i32_0 = arith.constant 0 : i32
    return %1, %c0_i32 : i32, i32
  }
  func.func @transform_3(%arg0: i32, %arg1: i32) -> (i32, i32, i32) {
    %c0_i32 = arith.constant 0 : i32
    %c0_i32_0 = arith.constant 0 : i32
    %c0_i32_1 = arith.constant 0 : i32
    return %arg0, %c0_i32, %c0_i32_0 : i32, i32, i32
  }
}

</mosaic_0001>

<bundles_post_ra>
// kernel: tpu_custom_call.1
= control target key start
LH: loop header
LB: loop body
LE: loop exit
PB: predicated region body
PF: predicated region fallthrough
CT: control target
= control target key end

     0   :  { %8 = vsyncpa [#allocation4], 0  ;;  %s254_s0 = inlined_call_operand.vmem [shape: f32[8,32], index: 0, kind: input, shape index: {}]   ;;  %s255_s1 = inlined_call_operand.hbm [shape: f32[8,32], index: 1, kind: input, shape index: {}]   ;;  %s256_s2 = inlined_call_operand.vmem [shape: f32[8,1], index: 2, kind: input, shape index: {}]   ;;  %s257_s3 = inlined_call_operand.hbm [shape: f32[1,1,1], index: 3, kind: output, shape index: {}]  }
   0x1   :  { %9 = vsyncpa [#allocation5], 0  ;;  %s198_s12 = smov [#allocation3]   ;;  %s150_s16 = scalar_lea.hbm %s255_s1, 128 }
   0x2   :  { %s27_s13 = sshll.u32 %s198_s12, 4  ;;  %p151_p0 = scmp.ne.s32.totalorder %s255_s1, %s150_s16  ;;  %s28_s13 = int_to_ptr.vmem [resolvable:$true] %s27_s13 }
   0x3   :  { %p154_p1 = scmp.lt.u32.totalorder %s150_s16, %s255_s1 }
   0x5   :  { %p156_p2 = pnand %p154_p1, %p151_p0 }
   0x7   :  { %159 = shalt.err (!%p156_p2)
}
   0x8   :  { %s160_s21 = scalar_lea.vmem %s28_s13, 128  ;;  %p165_p4 = scmp.lt.s32.totalorder %s28_s13, %s28_s13 }
   0x9   :  { %p161_p3 = scmp.ne.s32.totalorder %s28_s13, %s160_s21  ;;  %p166_p5 = scmp.lt.s32.totalorder %s160_s21, %s160_s21 }
   0xb   :  { %p167_p6 = por %p166_p5, %p165_p4 }
   0xd   :  { %p168_p7 = pnand %p167_p6, %p161_p3 }
   0xf   :  { %171 = shalt.err (!%p168_p7)
}
  0x10   :  { %30 = dma.hbm_to_vmem [thread:$0]  %s255_s1, 128, %s28_s13, [#allocation4]  }
  0x11   :  { %194 = dma.done.wait [#allocation4], 128  }
  0x12   :  { %195 = vsyncadd [#allocation4], 4294967168  ;;  %v71_v0 = vld [vmem:[%s254_s0] sm:$0xff]  ;;  %v72_v1 = vld [vmem:[#allocation3] sm:$0xff]  ;;  %vm76_vm0 = vcmask 261120   ;;  %vm69_vm1 = vcmask 7168  }
  0x13   :  { %v73_v2 = vsub.f32 %v71_v0, %v72_v1  ;;  %v199_v6 = vmov 0.0   ;;  %v87_v12 = vld [vmem:[%s256_s2] sm:$0xff]  ;;  %s200_s2 = smov [#allocation6]   ;;  %vm114_vm4 = vcmask 0  }
  0x14   :  { %70 = vst.msk [vmem:[#allocation2] sm:$0xff] %vm69_vm1, %v199_v6  ;;  %v90_v15 = vsub.f32 1.0, %v87_v12  ;;  %s122_s26 = sshll.u32 %s200_s2, 4  ;;  %s123_s26 = int_to_ptr.vmem [resolvable:$true] %s122_s26 }
  0x15   :  { %v74_v3 = vadd.f32 1e-06, %v73_v2  ;;  %s172_s28 = scalar_lea.vmem %s123_s26, 16  ;;  %s176_s29 = scalar_lea.vmem %s123_s26, 32 }
  0x16   :  { %p173_p8 = scmp.ne.s32.totalorder %s123_s26, %s172_s28  ;;  %p177_p9 = scmp.lt.s32.totalorder %s123_s26, %s123_s26 }
  0x17   :  { %v75_v4 = vmul.f32 %v74_v3, %v74_v3  ;;  %p178_p10 = scmp.lt.s32.totalorder %s176_s29, %s172_s28 }
  0x19   :  { %v77_v5 = vsel %vm76_vm0, %v75_v4, 0.0  ;;  %p179_p11 = por %p178_p10, %p177_p9 }
  0x1a   :  { %78 = vadd.xlane.f32.xlu0 %v77_v5 }
  0x1b   :  { %v95_v20 = vld [vmem:[#allocation2] sm:$0xff]  ;;  %p180_p12 = pnand %p179_p11, %p173_p8 }
  0xa7   :  { %v79_v7 = vpop.xlane.xlu0 %78 }
  0xa8   :  { %148 = vrsqrt.f32 %v79_v7  ;;  %vm82_vm2 = vcmp.eq.f32.partialorder %v79_v7, inf  ;;  %v85_v10 = vand.u32 2147483648, %v79_v7  ;;  %vm84_vm3 = vcmp.eq.f32.partialorder %v79_v7, 0.0 }
  0xa9   :  { %v91_v18 = vmul.f32 %v90_v15, %v79_v7 }
  0xb2   :  { %v149_v8 = vpop.eup %148 }
  0xb3   :  { %v81_v9 = vmul.f32 %v149_v8, %v79_v7 }
  0xb5   :  { %v83_v11 = vsel %vm82_vm2, %v79_v7, %v81_v9 }
  0xb6   :  { %v86_v13 = vsel %vm84_vm3, %v85_v10, %v83_v11 }
  0xb7   :  { %v88_v14 = vsub.f32 1.0, %v86_v13 }
  0xb9   :  { %v89_v16 = vmax.f32 %v88_v14, 0.0 }
  0xbb   :  { %v92_v17 = vmul.f32 %v89_v16, %v89_v16 }
  0xbd   :  { %v93_v19 = vmul.f32 %v92_v17, %v87_v12 }
  0xbf   :  { %v94_v21 = vadd.f32 %v93_v19, %v91_v18 }
  0xc1   :  { %v96_v22 = vadd.f32 %v95_v20, %v94_v21 }
  0xc3   :  { %98 = vst.msk [vmem:[#allocation2] sm:$0xff] %vm69_vm1, %v96_v22 }
  0xca   :  { %v102_v23 = vld [vmem:[#allocation2] sm:$0xff] }
  0xcb   :  { %v103_v24 = vsel %vm69_vm1, %v102_v23, 0.0 }
  0xcc   :  { %104 = vadd.xlane.f32.xlu0 %v103_v24 }
 0x159   :  { %v105_v25 = vpop.xlane.xlu0 %104 }
 0x15a   :  { %v106_v26 = vrot.slane %v105_v25, 4 }
 0x15c   :  { %v107_v27 = vadd.f32 %v106_v26, %v105_v25 }
 0x15e   :  { %v108_v28 = vrot.slane %v107_v27, 2 }
 0x160   :  { %v109_v29 = vadd.f32 %v108_v28, %v107_v27 }
 0x162   :  { %v110_v30 = vrot.slane %v109_v29, 1 }
 0x164   :  { %v111_v31 = vadd.f32 %v110_v30, %v109_v29 }
 0x166   :  { %143 = vpush %v111_v31 }
 0x197   :  { %s144_s27 = spop %143 }
 0x198   :  { %v113_v32 = vstv %s144_s27 }
 0x199   :  { %115 = vst.msk [vmem:[#allocation6] sm:$0x1] %vm114_vm4, %v113_v32 }
 0x19a   :  { %183 = shalt.err (!%p180_p12)
}
 0x19b   :  { %s184_s5 = scalar_lea.hbm %s257_s3, 16 }
 0x19c   :  { %p185_p13 = scmp.ne.s32.totalorder %s257_s3, %s184_s5  ;;  %p188_p0 = scmp.lt.u32.totalorder %s184_s5, %s257_s3 }
 0x19e   :  { %p190_p1 = pnand %p188_p0, %p185_p13 }
 0x1a0   :  { %193 = shalt.err (!%p190_p1)
}
 0x1a1   :  { %125 = dma.vmem_to_hbm [thread:$0]  %s123_s26, 16, %s257_s3, [#allocation5]  }
 0x1a2   :  { %196 = dma.done.wait [#allocation5], 16  }
 0x1a3   :  { %197 = vsyncadd [#allocation5], 4294967280 }
 0x1a4   :  { %129 = vsyncpa [#allocation4], 1 }
 0x1a5   :  { %130 = vsyncpa [#allocation5], 1 }

</bundles_post_ra>
